<compile_context>
chip_gen: v7x
topology: tpu7x:2x2x1
jax: 0.10.0
libtpu: 0.0.40
codegen_flags: <defaults>
</compile_context>

<pallas_src>
import jax
import jax.numpy as jnp
from jax.experimental import pallas as pl
from jax.experimental.pallas import tpu as pltpu


def se_gate_mul_kernel(w_ref, b_ref, xs_ref, x_ref, o_ref):
    # 1x1 conv on a single pixel == per-output-channel dot product.
    # VPU multiply (xs broadcast over sublanes) + XLU lane reduction;
    # the MXU buys nothing at [Cout, 64] x [64, 1].
    s = jnp.sum(w_ref[...] * xs_ref[...], axis=-1, keepdims=True) + b_ref[...]
    # PyTorch Hardsigmoid: clip(x / 6 + 0.5, 0, 1)  (== relu6(x + 3) / 6)
    gate = jnp.clip(s * (1.0 / 6.0) + 0.5, 0.0, 1.0)
    # Broadcast gate [Cblk, 1] across the lane (H*W) axis and scale x51.
    o_ref[...] = x_ref[...] * gate


def se_gate_mul(w, b, x54, x51, *, cout_blocks=1):
    """w: [Cout, Cin], b: [Cout], x54: [1, Cin, 1, 1], x51: [1, Cout, H, W]."""
    n, cout, h, wd = x51.shape
    cin = x54.shape[1]
    assert n == 1 and x54.shape == (1, cin, 1, 1)
    assert cout % cout_blocks == 0 and (cout // cout_blocks) % 8 == 0
    hw = h * wd
    block_c = cout // cout_blocks

    # Metadata-only reshapes (no transpose, no dtype cast, no extra HBM pass).
    xs = x54.reshape(1, cin)          # [1, Cin] row -> sublane-broadcast in kernel
    x = x51.reshape(cout, hw)         # channels on sublanes, H*W on lanes
    b2 = b.reshape(cout, 1)

    itemsize = jnp.dtype(x.dtype).itemsize
    cost = pl.CostEstimate(
        flops=2 * cout * cin + 5 * cout + cout * hw,
        transcendentals=0,
        bytes_accessed=(w.size + b2.size + xs.size + 2 * x.size) * itemsize,
    )

    out = pl.pallas_call(
        se_gate_mul_kernel,
        out_shape=jax.ShapeDtypeStruct((cout, hw), x.dtype),
        grid=(cout_blocks,),
        in_specs=[
            pl.BlockSpec((block_c, cin), lambda i: (i, 0)),   # weight slice
            pl.BlockSpec((block_c, 1), lambda i: (i, 0)),     # bias slice
            pl.BlockSpec((1, cin), lambda i: (0, 0)),         # x54 row (tiny, reloaded)
            pl.BlockSpec((block_c, hw), lambda i: (i, 0)),    # x51 slab slice
        ],
        out_specs=pl.BlockSpec((block_c, hw), lambda i: (i, 0)),
        compiler_params=pltpu.CompilerParams(
            dimension_semantics=("parallel",)),
        cost_estimate=cost,
        # In-place gating: output reuses x51's HBM buffer (caller donates x51).
        input_output_aliases={3: 0},
    )(w, b2, xs, x)

    return out.reshape(1, cout, h, wd)


if __name__ == "__main__":
    key = jax.random.PRNGKey(0)
    k_w, k_b, k_x54, k_x51 = jax.random.split(key, 4)

    CIN, COUT, H, W = 64, 240, 14, 14

    # Deterministic synthetic parameters (Conv2d(64, 240, kernel_size=1) shapes).
    w = jax.random.normal(k_w, (COUT, CIN), dtype=jnp.float32) * 0.05
    b = jax.random.normal(k_b, (COUT,), dtype=jnp.float32) * 0.05

    x54 = jax.random.normal(k_x54, (1, CIN, 1, 1), dtype=jnp.float32)
    x51 = jax.random.normal(k_x51, (1, COUT, H, W), dtype=jnp.float32)

    # Plain-JAX reference, computed BEFORE the kernel call because x51 is
    # donated to the kernel (the output aliases its buffer).
    s_ref = jnp.dot(w, x54.reshape(CIN, 1),
                    precision=jax.lax.Precision.HIGHEST).reshape(1, COUT, 1, 1)
    s_ref = s_ref + b.reshape(1, COUT, 1, 1)
    gate_ref = jnp.clip(s_ref * (1.0 / 6.0) + 0.5, 0.0, 1.0)
    ref = jax.block_until_ready(gate_ref * x51)

    run = jax.jit(se_gate_mul, donate_argnums=(3,),
                  static_argnames=("cout_blocks",))
    out = jax.block_until_ready(run(w, b, x54, x51))

    assert out.shape == (1, COUT, H, W)
    assert jnp.allclose(out, ref, atol=1e-5, rtol=1e-5)

    print("KERNEL_OK")
</pallas_src>

<mosaic_0001>
module attributes {stable_mosaic.version = 11 : i64} {
  func.func @se_gate_mul_kernel(%arg0: i32, %arg1: memref<240x64xf32, #tpu.memory_space<vmem>>, %arg2: memref<240x1xf32, #tpu.memory_space<vmem>>, %arg3: memref<1x64xf32, #tpu.memory_space<vmem>>, %arg4: memref<240x196xf32, #tpu.memory_space<vmem>>, %arg5: memref<240x196xf32, #tpu.memory_space<vmem>>) attributes {dimension_semantics = [#tpu.dimension_semantics<parallel>], iteration_bounds = array<i64: 1>, scalar_prefetch = 0 : i64, scratch_operands = 0 : i64, tpu.core_type = #tpu.core_type<tc>, window_params = [{transform_indices = @transform_0, window_bounds = array<i64: 240, 64>}, {transform_indices = @transform_1, window_bounds = array<i64: 240, 1>}, {pipeline_mode = #tpu.pipeline_mode<synchronous>, transform_indices = @transform_2, window_bounds = array<i64: 1, 64>}, {transform_indices = @transform_3, window_bounds = array<i64: 240, 196>}, {transform_indices = @transform_4, window_bounds = array<i64: 240, 196>}]} {
    %c0 = arith.constant 0 : index
    %c0_0 = arith.constant 0 : index
    %0 = vector.load %arg1[%c0, %c0_0] : memref<240x64xf32, #tpu.memory_space<vmem>>, vector<240x64xf32>
    %c0_1 = arith.constant 0 : index
    %c0_2 = arith.constant 0 : index
    %1 = vector.load %arg3[%c0_1, %c0_2] : memref<1x64xf32, #tpu.memory_space<vmem>>, vector<1x64xf32>
    %2 = vector.broadcast %1 : vector<1x64xf32> to vector<240x64xf32>
    %3 = arith.mulf %0, %2 : vector<240x64xf32>
    %cst = arith.constant dense<0.000000e+00> : vector<240xf32>
    %4 = vector.multi_reduction <add>, %3, %cst [1] : vector<240x64xf32> to vector<240xf32>
    %5 = vector.shape_cast %4 : vector<240xf32> to vector<240x1xf32>
    %c0_3 = arith.constant 0 : index
    %c0_4 = arith.constant 0 : index
    %6 = vector.load %arg2[%c0_3, %c0_4] : memref<240x1xf32, #tpu.memory_space<vmem>>, vector<240x1xf32>
    %7 = arith.addf %5, %6 : vector<240x1xf32>
    %cst_5 = arith.constant 0.166666672 : f32
    %8 = vector.broadcast %cst_5 : f32 to vector<240x1xf32>
    %9 = arith.mulf %7, %8 : vector<240x1xf32>
    %cst_6 = arith.constant 5.000000e-01 : f32
    %10 = vector.broadcast %cst_6 : f32 to vector<240x1xf32>
    %11 = arith.addf %9, %10 : vector<240x1xf32>
    %cst_7 = arith.constant 0.000000e+00 : f32
    %cst_8 = arith.constant 1.000000e+00 : f32
    %12 = vector.broadcast %cst_7 : f32 to vector<240x1xf32>
    %13 = arith.maximumf %12, %11 : vector<240x1xf32>
    %14 = vector.broadcast %cst_8 : f32 to vector<240x1xf32>
    %15 = arith.minimumf %14, %13 : vector<240x1xf32>
    %c0_9 = arith.constant 0 : index
    %c0_10 = arith.constant 0 : index
    %16 = vector.load %arg4[%c0_9, %c0_10] : memref<240x196xf32, #tpu.memory_space<vmem>>, vector<240x196xf32>
    %17 = vector.broadcast %15 : vector<240x1xf32> to vector<240x196xf32>
    %18 = arith.mulf %16, %17 : vector<240x196xf32>
    %c0_11 = arith.constant 0 : index
    %c0_12 = arith.constant 0 : index
    %19 = vector.load %arg5[%c0_11, %c0_12] : memref<240x196xf32, #tpu.memory_space<vmem>>, vector<240x196xf32>
    tpu.vector_store %arg5[%c0_11, %c0_12], %18 {strides = array<i32>} : memref<240x196xf32, #tpu.memory_space<vmem>>, vector<240x196xf32>,
    return
  }
  func.func @transform_0(%arg0: i32) -> (i32, i32) {
    %c0_i32 = arith.constant 0 : i32
    %c0_i32_0 = arith.constant 0 : i32
    return %arg0, %c0_i32 : i32, i32
  }
  func.func @transform_1(%arg0: i32) -> (i32, i32) {
    %c0_i32 = arith.constant 0 : i32
    %c0_i32_0 = arith.constant 0 : i32
    return %arg0, %c0_i32 : i32, i32
  }
  func.func @transform_2(%arg0: i32) -> (i32, i32) {
    %c0_i32 = arith.constant 0 : i32
    %c0_i32_0 = arith.constant 0 : i32
    %c0_i32_1 = arith.constant 0 : i32
    return %c0_i32, %c0_i32_0 : i32, i32
  }
  func.func @transform_3(%arg0: i32) -> (i32, i32) {
    %c0_i32 = arith.constant 0 : i32
    %c0_i32_0 = arith.constant 0 : i32
    return %arg0, %c0_i32 : i32, i32
  }
  func.func @transform_4(%arg0: i32) -> (i32, i32) {
    %c0_i32 = arith.constant 0 : i32
    %c0_i32_0 = arith.constant 0 : i32
    return %arg0, %c0_i32 : i32, i32
  }
}

</mosaic_0001>

<bundles_post_ra>
// kernel: se_gate_mul.1
= control target key start
LH: loop header
LB: loop body
LE: loop exit
PB: predicated region body
PF: predicated region fallthrough
CT: control target
= control target key end

     0   :  { %vm84_vm0 = vcmask 523264   ;;  %v694_v49 = vmov 0   ;;  %vm626_vm1 = vcmask 556032   ;;  %s1355_s0 = inlined_call_operand.vmem [shape: f32[240,64], index: 0, kind: input, shape index: {}]   ;;  %s1356_s2 = inlined_call_operand.vmem [shape: f32[1,64], index: 2, kind: input, shape index: {}]   ;;  %s1357_s1 = inlined_call_operand.vmem [shape: f32[240,1], index: 1, kind: input, shape index: {}]   ;;  %s1358_s3 = inlined_call_operand.vmem [shape: f32[240,196], index: 3, kind: input, shape index: {}, may-alias: {3,4}]   ;;  %s1359_s4 = inlined_call_operand.vmem [shape: f32[240,196], index: 4, kind: output, shape index: {}, may-alias: {3,4}]  }
   0x1   :  { %v19_v0 = vld [vmem:[%s1355_s0 + $0x10] sm:$0xff]  ;;  %v726_v1 = vld [vmem:[%s1356_s2] ss:$0 sm:$0xff]  ;;  %v20_v5 = vld [vmem:[%s1355_s0 + $0x18] sm:$0xff]  ;;  %692 = vset.pattern.permute.xlu0 %v694_v49  ;;  %693 = vset.pattern.permute.xlu1 %v694_v49 }
   0x2   :  { %v17_v2 = vld [vmem:[%s1355_s0] sm:$0xff]  ;;  %v56_v3 = vmul.f32 %v726_v1, %v19_v0  ;;  %v18_v6 = vld [vmem:[%s1355_s0 + $0x8] sm:$0xff]  ;;  %v57_v7 = vmul.f32 %v726_v1, %v20_v5  ;;  %v24_v17 = vld [vmem:[%s1355_s0 + $0x38] sm:$0xff] }
   0x3   :  { %v54_v4 = vmul.f32 %v726_v1, %v17_v2  ;;  %v55_v8 = vmul.f32 %v726_v1, %v18_v6  ;;  %v22_v9 = vld [vmem:[%s1355_s0 + $0x28] sm:$0xff]  ;;  %v21_v10 = vld [vmem:[%s1355_s0 + $0x20] sm:$0xff]  ;;  %v23_v18 = vld [vmem:[%s1355_s0 + $0x30] sm:$0xff]  ;;  %v61_v20 = vmul.f32 %v726_v1, %v24_v17 }
   0x4   :  { %v91_v11 = vsel %vm84_vm0, %v56_v3, 0.0  ;;  %v94_v13 = vsel %vm84_vm0, %v57_v7, 0.0  ;;  %v59_v15 = vmul.f32 %v726_v1, %v22_v9  ;;  %v58_v16 = vmul.f32 %v726_v1, %v21_v10  ;;  %v26_v23 = vld [vmem:[%s1355_s0 + $0x48] sm:$0xff]  ;;  %v25_v24 = vld [vmem:[%s1355_s0 + $0x40] sm:$0xff]  ;;  %v28_v29 = vld [vmem:[%s1355_s0 + $0x58] sm:$0xff] }
   0x5   :  { %v85_v12 = vsel %vm84_vm0, %v54_v4, 0.0  ;;  %92 = vadd.xlane.f32.xlu1 %v91_v11  ;;  %v88_v14 = vsel %vm84_vm0, %v55_v8, 0.0  ;;  %v60_v22 = vmul.f32 %v726_v1, %v23_v18  ;;  %v106_v25 = vsel %vm84_vm0, %v61_v20, 0.0  ;;  %v27_v30 = vld [vmem:[%s1355_s0 + $0x50] sm:$0xff]  ;;  %v30_v35 = vld [vmem:[%s1355_s0 + $0x68] sm:$0xff]  ;;  %v29_v36 = vld [vmem:[%s1355_s0 + $0x60] sm:$0xff] }
   0x6   :  { %86 = vadd.xlane.f32.xlu0 %v85_v12  ;;  %v100_v19 = vsel %vm84_vm0, %v59_v15, 0.0  ;;  %v97_v21 = vsel %vm84_vm0, %v58_v16, 0.0  ;;  %v63_v26 = vmul.f32 %v726_v1, %v26_v23  ;;  %v62_v28 = vmul.f32 %v726_v1, %v25_v24  ;;  %v32_v41 = vld [vmem:[%s1355_s0 + $0x78] sm:$0xff]  ;;  %v31_v42 = vld [vmem:[%s1355_s0 + $0x70] sm:$0xff]  ;;  %v34_v47 = vld [vmem:[%s1355_s0 + $0x88] sm:$0xff] }
   0x7   :  { %v103_v27 = vsel %vm84_vm0, %v60_v22, 0.0  ;;  %v65_v32 = vmul.f32 %v726_v1, %v28_v29  ;;  %v64_v34 = vmul.f32 %v726_v1, %v27_v30  ;;  %v67_v38 = vmul.f32 %v726_v1, %v30_v35  ;;  %v33_v48 = vld [vmem:[%s1355_s0 + $0x80] sm:$0xff]  ;;  %v36_v54 = vld [vmem:[%s1355_s0 + $0x98] sm:$0xff]  ;;  %v35_v55 = vld [vmem:[%s1355_s0 + $0x90] sm:$0xff] }
   0x8   :  { %v112_v31 = vsel %vm84_vm0, %v63_v26, 0.0  ;;  %v109_v33 = vsel %vm84_vm0, %v62_v28, 0.0  ;;  %v66_v40 = vmul.f32 %v726_v1, %v29_v36  ;;  %v69_v44 = vmul.f32 %v726_v1, %v32_v41  ;;  %v38_v60 = vld [vmem:[%s1355_s0 + $0xa8] sm:$0xff]  ;;  %v37_v61 = vld [vmem:[%s1355_s0 + $0xa0] sm:$0xff]  ;;  %v40_v3 = vld [vmem:[%s1355_s0 + $0xb8] sm:$0xff] }
   0x9   :  { %95 = vadd.xlane.f32.xlu1 %v94_v13  ;;  %v118_v37 = vsel %vm84_vm0, %v65_v32, 0.0  ;;  %v115_v39 = vsel %vm84_vm0, %v64_v34, 0.0  ;;  %v124_v43 = vsel %vm84_vm0, %v67_v38, 0.0  ;;  %v68_v46 = vmul.f32 %v726_v1, %v31_v42  ;;  %v39_v4 = vld [vmem:[%s1355_s0 + $0xb0] sm:$0xff]  ;;  %v42_v9 = vld [vmem:[%s1355_s0 + $0xc8] sm:$0xff]  ;;  %v41_v10 = vld [vmem:[%s1355_s0 + $0xc0] sm:$0xff] }
   0xa   :  { %89 = vadd.xlane.f32.xlu0 %v88_v14  ;;  %v121_v45 = vsel %vm84_vm0, %v66_v40, 0.0  ;;  %v130_v50 = vsel %vm84_vm0, %v69_v44, 0.0  ;;  %v71_v51 = vmul.f32 %v726_v1, %v34_v47  ;;  %v70_v53 = vmul.f32 %v726_v1, %v33_v48  ;;  %v44_v15 = vld [vmem:[%s1355_s0 + $0xd8] sm:$0xff]  ;;  %v43_v16 = vld [vmem:[%s1355_s0 + $0xd0] sm:$0xff]  ;;  %v45_v22 = vld [vmem:[%s1355_s0 + $0xe0] sm:$0xff] }
   0xb   :  { %v127_v52 = vsel %vm84_vm0, %v68_v46, 0.0  ;;  %v73_v57 = vmul.f32 %v726_v1, %v36_v54  ;;  %v72_v59 = vmul.f32 %v726_v1, %v35_v55  ;;  %v75_v63 = vmul.f32 %v726_v1, %v38_v60  ;;  %v177_v29 = vld [vmem:[%s1357_s1 + $0x10] sm:$0xff]  ;;  %v175_v30 = vld [vmem:[%s1357_s1] sm:$0xff]  ;;  %v178_v34 = vld [vmem:[%s1357_s1 + $0x18] sm:$0xff] }
   0xc   :  { %v136_v56 = vsel %vm84_vm0, %v71_v51, 0.0  ;;  %v133_v58 = vsel %vm84_vm0, %v70_v53, 0.0  ;;  %v74_v2 = vmul.f32 %v726_v1, %v37_v61  ;;  %v77_v6 = vmul.f32 %v726_v1, %v40_v3  ;;  %v176_v35 = vld [vmem:[%s1357_s1 + $0x8] sm:$0xff]  ;;  %v179_v44 = vld [vmem:[%s1357_s1 + $0x20] sm:$0xff]  ;;  %v181_v60 = vld [vmem:[%s1357_s1 + $0x30] sm:$0xff] }
   0xd   :  { %101 = vadd.xlane.f32.xlu1 %v100_v19  ;;  %v142_v62 = vsel %vm84_vm0, %v73_v57, 0.0  ;;  %v139_v0 = vsel %vm84_vm0, %v72_v59, 0.0  ;;  %v148_v5 = vsel %vm84_vm0, %v75_v63, 0.0  ;;  %v76_v8 = vmul.f32 %v726_v1, %v39_v4  ;;  %v182_v4 = vld [vmem:[%s1357_s1 + $0x38] sm:$0xff] }
   0xe   :  { %98 = vadd.xlane.f32.xlu0 %v97_v21  ;;  %v145_v7 = vsel %vm84_vm0, %v74_v2, 0.0  ;;  %v154_v11 = vsel %vm84_vm0, %v77_v6, 0.0  ;;  %v79_v12 = vmul.f32 %v726_v1, %v42_v9  ;;  %v78_v14 = vmul.f32 %v726_v1, %v41_v10  ;;  %v46_v21 = vld [vmem:[%s1355_s0 + $0xe8] sm:$0xff] }
   0xf   :  { %v151_v13 = vsel %vm84_vm0, %v76_v8, 0.0  ;;  %v81_v18 = vmul.f32 %v726_v1, %v44_v15  ;;  %v80_v20 = vmul.f32 %v726_v1, %v43_v16  ;;  %v83_v24 = vmul.f32 %v726_v1, %v46_v21 }
  0x10   :  { %v160_v17 = vsel %vm84_vm0, %v79_v12, 0.0  ;;  %v157_v19 = vsel %vm84_vm0, %v78_v14, 0.0  ;;  %v82_v26 = vmul.f32 %v726_v1, %v45_v22  ;;  %v186_v12 = vld [vmem:[%s1357_s1 + $0x58] sm:$0xff] }
  0x11   :  { %107 = vadd.xlane.f32.xlu1 %v106_v25  ;;  %v166_v23 = vsel %vm84_vm0, %v81_v18, 0.0  ;;  %v163_v25 = vsel %vm84_vm0, %v80_v20, 0.0 }
  0x12   :  { %104 = vadd.xlane.f32.xlu0 %v103_v27  ;;  %v172_v27 = vsel %vm84_vm0, %v83_v24, 0.0  ;;  %v169_v28 = vsel %vm84_vm0, %v82_v26, 0.0  ;;  %v188_v24 = vld [vmem:[%s1357_s1 + $0x68] sm:$0xff] }
  0x15   :  { %113 = vadd.xlane.f32.xlu1 %v112_v31 }
  0x16   :  { %110 = vadd.xlane.f32.xlu0 %v109_v33 }
  0x19   :  { %119 = vadd.xlane.f32.xlu1 %v118_v37 }
  0x1a   :  { %116 = vadd.xlane.f32.xlu0 %v115_v39 }
  0x1d   :  { %125 = vadd.xlane.f32.xlu1 %v124_v43  ;;  %v180_v43 = vld [vmem:[%s1357_s1 + $0x28] sm:$0xff] }
  0x1e   :  { %122 = vadd.xlane.f32.xlu0 %v121_v45 }
  0x21   :  { %131 = vadd.xlane.f32.xlu1 %v130_v50 }
  0x22   :  { %128 = vadd.xlane.f32.xlu0 %v127_v52 }
  0x25   :  { %137 = vadd.xlane.f32.xlu1 %v136_v56 }
  0x26   :  { %134 = vadd.xlane.f32.xlu0 %v133_v58 }
  0x29   :  { %143 = vadd.xlane.f32.xlu1 %v142_v62 }
  0x2a   :  { %140 = vadd.xlane.f32.xlu0 %v139_v0  ;;  %v184_v0 = vld [vmem:[%s1357_s1 + $0x48] sm:$0xff] }
  0x2d   :  { %149 = vadd.xlane.f32.xlu1 %v148_v5 }
  0x2e   :  { %146 = vadd.xlane.f32.xlu0 %v145_v7 }
  0x31   :  { %155 = vadd.xlane.f32.xlu1 %v154_v11 }
  0x32   :  { %152 = vadd.xlane.f32.xlu0 %v151_v13  ;;  %v183_v13 = vld [vmem:[%s1357_s1 + $0x40] sm:$0xff] }
  0x35   :  { %161 = vadd.xlane.f32.xlu1 %v160_v17 }
  0x36   :  { %158 = vadd.xlane.f32.xlu0 %v157_v19 }
  0x39   :  { %167 = vadd.xlane.f32.xlu1 %v166_v23 }
  0x3a   :  { %164 = vadd.xlane.f32.xlu0 %v163_v25 }
  0x3d   :  { %173 = vadd.xlane.f32.xlu1 %v172_v27 }
  0x3e   :  { %170 = vadd.xlane.f32.xlu0 %v169_v28 }
  0x92   :  { %v93_v31 = vpop.xlane.xlu1 %92 }
  0x93   :  { %v87_v32 = vpop.xlane.xlu0 %86  ;;  %v207_v33 = vadd.f32 %v177_v29, %v93_v31 }
  0x94   :  { %v205_v1 = vadd.f32 %v175_v30, %v87_v32  ;;  %v185_v30 = vld [vmem:[%s1357_s1 + $0x50] sm:$0xff] }
  0x95   :  { %v237_v36 = vmul.f32 0.16666667, %v207_v33 }
  0x96   :  { %v235_v37 = vmul.f32 0.16666667, %v205_v1  ;;  %v96_v38 = vpop.xlane.xlu1 %95 }
  0x97   :  { %v90_v39 = vpop.xlane.xlu0 %89  ;;  %v208_v41 = vadd.f32 %v178_v34, %v96_v38  ;;  %v267_v45 = vadd.f32 0.5, %v237_v36  ;;  %v190_v36 = vld [vmem:[%s1357_s1 + $0x78] sm:$0xff] }
  0x98   :  { %v265_v40 = vadd.f32 0.5, %v235_v37  ;;  %v206_v42 = vadd.f32 %v176_v35, %v90_v39 }
  0x99   :  { %v238_v47 = vmul.f32 0.16666667, %v208_v41  ;;  %v297_v55 = vmax.f32 %v267_v45, 0.0 }
  0x9a   :  { %v295_v46 = vmax.f32 %v265_v40, 0.0  ;;  %v236_v48 = vmul.f32 0.16666667, %v206_v42  ;;  %v102_v49 = vpop.xlane.xlu1 %101 }
  0x9b   :  { %v99_v50 = vpop.xlane.xlu0 %98  ;;  %v210_v53 = vadd.f32 %v180_v43, %v102_v49  ;;  %v268_v56 = vadd.f32 0.5, %v238_v47  ;;  %v327_v2 = vmin.f32 %v297_v55, 1.0  ;;  %v187_v43 = vld [vmem:[%s1357_s1 + $0x60] sm:$0xff]  ;;  %v192_v49 = vld [vmem:[%s1357_s1 + $0x88] sm:$0xff] }
  0x9c   :  { %v325_v51 = vmin.f32 %v295_v46, 1.0  ;;  %v266_v52 = vadd.f32 0.5, %v236_v48  ;;  %v209_v54 = vadd.f32 %v179_v44, %v99_v50 }
  0x9d   :  { %v240_v63 = vmul.f32 0.16666667, %v210_v53  ;;  %v298_v3 = vmax.f32 %v268_v56, 0.0 }
  0x9e   :  { %v296_v57 = vmax.f32 %v266_v52, 0.0  ;;  %417 = vperm.xlu0 %692, %v325_v51   ;;  %v108_v58 = vpop.xlane.xlu1 %107  ;;  %v239_v59 = vmul.f32 0.16666667, %v209_v54 }
  0x9f   :  { %v105_v61 = vpop.xlane.xlu0 %104  ;;  %v270_v10 = vadd.f32 0.5, %v240_v63  ;;  %v212_v11 = vadd.f32 %v182_v4, %v108_v58  ;;  %v328_v14 = vmin.f32 %v298_v3, 1.0  ;;  %v189_v58 = vld [vmem:[%s1357_s1 + $0x70] sm:$0xff] }
  0xa0   :  { %v326_v62 = vmin.f32 %v296_v57, 1.0  ;;  %v269_v5 = vadd.f32 0.5, %v239_v59  ;;  %v211_v6 = vadd.f32 %v181_v60, %v105_v61 }
  0xa1   :  { %v300_v22 = vmax.f32 %v270_v10, 0.0  ;;  %v242_v23 = vmul.f32 0.16666667, %v212_v11 }
  0xa2   :  { %422 = vperm.xlu1 %693, %v326_v62   ;;  %v114_v7 = vpop.xlane.xlu1 %113  ;;  %v299_v16 = vmax.f32 %v269_v5, 0.0  ;;  %v241_v17 = vmul.f32 0.16666667, %v211_v6 }
  0xa3   :  { %v111_v8 = vpop.xlane.xlu0 %110  ;;  %v214_v9 = vadd.f32 %v184_v0, %v114_v7  ;;  %v272_v35 = vadd.f32 0.5, %v242_v23  ;;  %v330_v39 = vmin.f32 %v300_v22, 1.0  ;;  %v194_v0 = vld [vmem:[%s1357_s1 + $0x98] sm:$0xff]  ;;  %v193_v22 = vld [vmem:[%s1357_s1 + $0x90] sm:$0xff] }
  0xa4   :  { %v213_v25 = vadd.f32 %v183_v13, %v111_v8  ;;  %v329_v27 = vmin.f32 %v299_v16, 1.0  ;;  %v271_v29 = vadd.f32 0.5, %v241_v17  ;;  %v196_v16 = vld [vmem:[%s1357_s1 + $0xa8] sm:$0xff] }
  0xa5   :  { %v244_v15 = vmul.f32 0.16666667, %v214_v9  ;;  %v302_v53 = vmax.f32 %v272_v35, 0.0  ;;  %v191_v9 = vld [vmem:[%s1357_s1 + $0x80] sm:$0xff] }
  0xa6   :  { %427 = vperm.xlu1 %693, %v327_v2   ;;  %v120_v18 = vpop.xlane.xlu1 %119  ;;  %v243_v37 = vmul.f32 0.16666667, %v213_v25  ;;  %v301_v42 = vmax.f32 %v271_v29, 0.0 }
  0xa7   :  { %v117_v19 = vpop.xlane.xlu0 %116  ;;  %v274_v20 = vadd.f32 0.5, %v244_v15  ;;  %v216_v21 = vadd.f32 %v186_v12, %v120_v18  ;;  %v332_v4 = vmin.f32 %v302_v53, 1.0 }
  0xa8   :  { %v215_v38 = vadd.f32 %v185_v30, %v117_v19  ;;  %v273_v50 = vadd.f32 0.5, %v243_v37  ;;  %v331_v55 = vmin.f32 %v301_v42, 1.0  ;;  %v198_v30 = vld [vmem:[%s1357_s1 + $0xb8] sm:$0xff]  ;;  %v200_v42 = vld [vmem:[%s1357_s1 + $0xc8] sm:$0xff] }
  0xa9   :  { %v304_v26 = vmax.f32 %v274_v20, 0.0  ;;  %v246_v28 = vmul.f32 0.16666667, %v216_v21 }
  0xaa   :  { %432 = vperm.xlu1 %693, %v328_v14   ;;  %v126_v31 = vpop.xlane.xlu1 %125  ;;  %v245_v51 = vmul.f32 0.16666667, %v215_v38  ;;  %v303_v63 = vmax.f32 %v273_v50, 0.0 }
  0xab   :  { %v123_v32 = vpop.xlane.xlu0 %122  ;;  %v334_v33 = vmin.f32 %v304_v26, 1.0  ;;  %v276_v1 = vadd.f32 0.5, %v246_v28  ;;  %v218_v34 = vadd.f32 %v188_v24, %v126_v31 }
  0xac   :  { %v217_v52 = vadd.f32 %v187_v43, %v123_v32  ;;  %v275_v2 = vadd.f32 0.5, %v245_v51  ;;  %v333_v14 = vmin.f32 %v303_v63, 1.0  ;;  %v195_v32 = vld [vmem:[%s1357_s1 + $0xa0] sm:$0xff] }
  0xad   :  { %v306_v40 = vmax.f32 %v276_v1, 0.0  ;;  %v248_v41 = vmul.f32 0.16666667, %v218_v34  ;;  %462 = vperm.xlu0 %692, %v334_v33  }
  0xae   :  { %437 = vperm.xlu1 %693, %v329_v27   ;;  %v132_v44 = vpop.xlane.xlu1 %131  ;;  %v247_v3 = vmul.f32 0.16666667, %v217_v52  ;;  %v305_v15 = vmax.f32 %v275_v2, 0.0 }
  0xaf   :  { %v129_v45 = vpop.xlane.xlu0 %128  ;;  %v336_v46 = vmin.f32 %v306_v40, 1.0  ;;  %v278_v47 = vadd.f32 0.5, %v248_v41  ;;  %v220_v48 = vadd.f32 %v190_v36, %v132_v44 }
  0xb0   :  { %v219_v7 = vadd.f32 %v189_v58, %v129_v45  ;;  %v277_v17 = vadd.f32 0.5, %v247_v3  ;;  %v335_v28 = vmin.f32 %v305_v15, 1.0  ;;  %v201_v15 = vld [vmem:[%s1357_s1 + $0xd0] sm:$0xff] }
  0xb1   :  { %v308_v54 = vmax.f32 %v278_v47, 0.0  ;;  %v250_v56 = vmul.f32 0.16666667, %v220_v48  ;;  %472 = vperm.xlu0 %692, %v336_v46  }
  0xb2   :  { %442 = vperm.xlu1 %693, %v330_v39   ;;  %v138_v57 = vpop.xlane.xlu1 %137  ;;  %v249_v20 = vmul.f32 0.16666667, %v219_v7  ;;  %v307_v29 = vmax.f32 %v277_v17, 0.0 }
  0xb3   :  { %v135_v59 = vpop.xlane.xlu0 %134  ;;  %v338_v60 = vmin.f32 %v308_v54, 1.0  ;;  %v280_v61 = vadd.f32 0.5, %v250_v56  ;;  %v222_v62 = vadd.f32 %v192_v49, %v138_v57  ;;  %v197_v49 = vld [vmem:[%s1357_s1 + $0xb0] sm:$0xff] }
  0xb4   :  { %v221_v21 = vadd.f32 %v191_v9, %v135_v59  ;;  %v279_v34 = vadd.f32 0.5, %v249_v20  ;;  %v337_v41 = vmin.f32 %v307_v29, 1.0 }
  0xb5   :  { %v310_v5 = vmax.f32 %v280_v61, 0.0  ;;  %v252_v6 = vmul.f32 0.16666667, %v222_v62  ;;  %482 = vperm.xlu0 %692, %v338_v60  }
  0xb6   :  { %447 = vperm.xlu1 %693, %v331_v55   ;;  %v144_v8 = vpop.xlane.xlu1 %143  ;;  %v251_v35 = vmul.f32 0.16666667, %v221_v21  ;;  %v309_v47 = vmax.f32 %v279_v34, 0.0  ;;  %v202_v55 = vld [vmem:[%s1357_s1 + $0xd8] sm:$0xff] }
  0xb7   :  { %v141_v10 = vpop.xlane.xlu0 %140  ;;  %v340_v11 = vmin.f32 %v310_v5, 1.0  ;;  %v282_v12 = vadd.f32 0.5, %v252_v6  ;;  %v224_v13 = vadd.f32 %v194_v0, %v144_v8  ;;  %v199_v0 = vld [vmem:[%s1357_s1 + $0xc0] sm:$0xff]  ;;  %v204_v6 = vld [vmem:[%s1357_s1 + $0xe8] sm:$0xff] }
  0xb8   :  { %v223_v31 = vadd.f32 %v193_v22, %v141_v10  ;;  %v281_v48 = vadd.f32 0.5, %v251_v35  ;;  %v339_v60 = vmin.f32 %v309_v47, 1.0  ;;  %v356_v47 = vld [vmem:[%s1358_s3 + $0x8] sm:$0xff] }
  0xb9   :  { %v312_v18 = vmax.f32 %v282_v12, 0.0  ;;  %v254_v19 = vmul.f32 0.16666667, %v224_v13  ;;  %492 = vperm.xlu0 %692, %v340_v11  }
  0xba   :  { %452 = vperm.xlu1 %693, %v332_v4   ;;  %v150_v23 = vpop.xlane.xlu1 %149  ;;  %v253_v43 = vmul.f32 0.16666667, %v223_v31  ;;  %v311_v62 = vmax.f32 %v281_v48, 0.0 }
  0xbb   :  { %v147_v24 = vpop.xlane.xlu0 %146  ;;  %v342_v25 = vmin.f32 %v312_v18, 1.0  ;;  %v284_v26 = vadd.f32 0.5, %v254_v19  ;;  %v226_v27 = vadd.f32 %v196_v16, %v150_v23 }
  0xbc   :  { %v225_v44 = vadd.f32 %v195_v32, %v147_v24  ;;  %v283_v56 = vadd.f32 0.5, %v253_v43  ;;  %v341_v11 = vmin.f32 %v311_v62, 1.0 }
  0xbd   :  { %v314_v33 = vmax.f32 %v284_v26, 0.0  ;;  %v256_v1 = vmul.f32 0.16666667, %v226_v27  ;;  %502 = vperm.xlu0 %692, %v342_v25   ;;  %v203_v26 = vld [vmem:[%s1357_s1 + $0xe0] sm:$0xff] }
  0xbe   :  { %457 = vperm.xlu1 %693, %v333_v14   ;;  %v156_v36 = vpop.xlane.xlu1 %155  ;;  %v255_v57 = vmul.f32 0.16666667, %v225_v44  ;;  %v313_v5 = vmax.f32 %v283_v56, 0.0 }
  0xbf   :  { %v153_v37 = vpop.xlane.xlu0 %152  ;;  %v344_v38 = vmin.f32 %v314_v33, 1.0  ;;  %v286_v39 = vadd.f32 0.5, %v256_v1  ;;  %v228_v40 = vadd.f32 %v198_v30, %v156_v36 }
  0xc0   :  { %v227_v58 = vadd.f32 %v197_v49, %v153_v37  ;;  %v285_v7 = vadd.f32 0.5, %v255_v57  ;;  %v343_v19 = vmin.f32 %v313_v5, 1.0 }
  0xc1   :  { %v316_v45 = vmax.f32 %v286_v39, 0.0  ;;  %v258_v46 = vmul.f32 0.16666667, %v228_v40  ;;  %512 = vperm.xlu0 %692, %v344_v38  }
  0xc2   :  { %467 = vperm.xlu1 %693, %v335_v28   ;;  %v162_v50 = vpop.xlane.xlu1 %161  ;;  %v257_v8 = vmul.f32 0.16666667, %v227_v58  ;;  %v315_v20 = vmax.f32 %v285_v7, 0.0 }
  0xc3   :  { %v159_v51 = vpop.xlane.xlu0 %158  ;;  %v346_v52 = vmin.f32 %v316_v45, 1.0  ;;  %v288_v53 = vadd.f32 0.5, %v258_v46  ;;  %v230_v54 = vadd.f32 %v200_v42, %v162_v50  ;;  %v355_v46 = vld [vmem:[%s1358_s3] sm:$0xff] }
  0xc4   :  { %v229_v13 = vadd.f32 %v199_v0, %v159_v51  ;;  %v287_v21 = vadd.f32 0.5, %v257_v8  ;;  %v345_v30 = vmin.f32 %v315_v20, 1.0  ;;  %v357_v51 = vld [vmem:[%s1358_s3 + $0x10] sm:$0xff] }
  0xc5   :  { %v318_v59 = vmax.f32 %v288_v53, 0.0  ;;  %v260_v61 = vmul.f32 0.16666667, %v230_v54  ;;  %522 = vperm.xlu0 %692, %v346_v52   ;;  %v358_v52 = vld [vmem:[%s1358_s3 + $0x18] sm:$0xff] }
  0xc6   :  { %477 = vperm.xlu1 %693, %v337_v41   ;;  %v168_v63 = vpop.xlane.xlu1 %167  ;;  %v259_v24 = vmul.f32 0.16666667, %v229_v13  ;;  %v317_v31 = vmax.f32 %v287_v21, 0.0 }
  0xc7   :  { %v348_v2 = vmin.f32 %v318_v59, 1.0  ;;  %v290_v3 = vadd.f32 0.5, %v260_v61  ;;  %v232_v4 = vadd.f32 %v202_v55, %v168_v63  ;;  %v165_v9 = vpop.xlane.xlu0 %164 }
  0xc8   :  { %v231_v25 = vadd.f32 %v201_v15, %v165_v9  ;;  %v289_v33 = vadd.f32 0.5, %v259_v24  ;;  %v347_v36 = vmin.f32 %v317_v31, 1.0 }
  0xc9   :  { %v320_v10 = vmax.f32 %v290_v3, 0.0  ;;  %v262_v12 = vmul.f32 0.16666667, %v232_v4  ;;  %532 = vperm.xlu0 %692, %v348_v2  }
  0xca   :  { %487 = vperm.xlu1 %693, %v339_v60   ;;  %v174_v14 = vpop.xlane.xlu1 %173  ;;  %v261_v1 = vmul.f32 0.16666667, %v231_v25  ;;  %v319_v37 = vmax.f32 %v289_v33, 0.0 }
  0xcb   :  { %v350_v16 = vmin.f32 %v320_v10, 1.0  ;;  %v292_v17 = vadd.f32 0.5, %v262_v12  ;;  %v234_v18 = vadd.f32 %v204_v6, %v174_v14  ;;  %v171_v27 = vpop.xlane.xlu0 %170 }
  0xcc   :  { %v233_v34 = vadd.f32 %v203_v26, %v171_v27  ;;  %v291_v38 = vadd.f32 0.5, %v261_v1  ;;  %v349_v40 = vmin.f32 %v319_v37, 1.0 }
  0xcd   :  { %v322_v22 = vmax.f32 %v292_v17, 0.0  ;;  %v264_v23 = vmul.f32 0.16666667, %v234_v18  ;;  %542 = vperm.xlu0 %692, %v350_v16  }
  0xce   :  { %497 = vperm.xlu1 %693, %v341_v11   ;;  %v263_v39 = vmul.f32 0.16666667, %v233_v34  ;;  %v321_v41 = vmax.f32 %v291_v38, 0.0 }
  0xcf   :  { %v352_v28 = vmin.f32 %v322_v22, 1.0  ;;  %v294_v29 = vadd.f32 0.5, %v264_v23 }
  0xd0   :  { %v293_v42 = vadd.f32 0.5, %v263_v39  ;;  %v351_v43 = vmin.f32 %v321_v41, 1.0 }
  0xd1   :  { %v324_v32 = vmax.f32 %v294_v29, 0.0  ;;  %552 = vperm.xlu0 %692, %v352_v28  }
  0xd2   :  { %507 = vperm.xlu1 %693, %v343_v19   ;;  %v323_v44 = vmax.f32 %v293_v42, 0.0 }
  0xd3   :  { %v354_v35 = vmin.f32 %v324_v32, 1.0 }
  0xd4   :  { %v353_v45 = vmin.f32 %v323_v44, 1.0 }
  0xd5   :  { %562 = vperm.xlu0 %692, %v354_v35  }
  0xd6   :  { %517 = vperm.xlu1 %693, %v345_v30  }
  0xda   :  { %527 = vperm.xlu1 %693, %v347_v36  }
  0xde   :  { %537 = vperm.xlu1 %693, %v349_v40  }
  0xe2   :  { %547 = vperm.xlu1 %693, %v351_v43  }
  0xe6   :  { %557 = vperm.xlu1 %693, %v353_v45  }
 0x11d   :  { %v418_v48 = vpop.permute.xlu0 %417 }
 0x11e   :  { %v565_v49 = vmul.f32 %v418_v48, %v355_v46  ;;  %v566_v50 = vmul.f32 %v418_v48, %v356_v47 }
 0x120   :  { %625 = vst [vmem:[%s1359_s4] sm:$0xff] %v565_v49  ;;  %627 = vst.msk [vmem:[%s1359_s4 + $0x8] sm:$0xff] %vm626_vm1, %v566_v50 }
 0x121   :  { %v423_v53 = vpop.permute.xlu1 %422 }
 0x122   :  { %v567_v54 = vmul.f32 %v423_v53, %v357_v51  ;;  %v568_v55 = vmul.f32 %v423_v53, %v358_v52 }
 0x125   :  { %v428_v58 = vpop.permute.xlu1 %427 }
 0x127   :  { %v359_v56 = vld [vmem:[%s1358_s3 + $0x20] sm:$0xff]  ;;  %v360_v57 = vld [vmem:[%s1358_s3 + $0x28] sm:$0xff] }
 0x128   :  { %628 = vst [vmem:[%s1359_s4 + $0x10] sm:$0xff] %v567_v54  ;;  %629 = vst.msk [vmem:[%s1359_s4 + $0x18] sm:$0xff] %vm626_vm1, %v568_v55  ;;  %v569_v59 = vmul.f32 %v428_v58, %v359_v56  ;;  %v570_v60 = vmul.f32 %v428_v58, %v360_v57 }
 0x129   :  { %v433_v63 = vpop.permute.xlu1 %432 }
 0x12c   :  { %v463_v8 = vpop.permute.xlu0 %462 }
 0x12d   :  { %v438_v7 = vpop.permute.xlu1 %437 }
 0x12f   :  { %v361_v61 = vld [vmem:[%s1358_s3 + $0x30] sm:$0xff]  ;;  %v362_v62 = vld [vmem:[%s1358_s3 + $0x38] sm:$0xff] }
 0x130   :  { %630 = vst [vmem:[%s1359_s4 + $0x20] sm:$0xff] %v569_v59  ;;  %631 = vst.msk [vmem:[%s1359_s4 + $0x28] sm:$0xff] %vm626_vm1, %v570_v60  ;;  %v571_v0 = vmul.f32 %v433_v63, %v361_v61  ;;  %v572_v2 = vmul.f32 %v433_v63, %v362_v62  ;;  %v473_v18 = vpop.permute.xlu0 %472 }
 0x131   :  { %v443_v17 = vpop.permute.xlu1 %442 }
 0x134   :  { %v483_v28 = vpop.permute.xlu0 %482 }
 0x135   :  { %v448_v27 = vpop.permute.xlu1 %447 }
 0x137   :  { %v363_v3 = vld [vmem:[%s1358_s3 + $0x40] sm:$0xff]  ;;  %v364_v4 = vld [vmem:[%s1358_s3 + $0x48] sm:$0xff]  ;;  %v373_v5 = vld [vmem:[%s1358_s3 + $0x90] sm:$0xff] }
 0x138   :  { %v374_v6 = vld [vmem:[%s1358_s3 + $0x98] sm:$0xff]  ;;  %v573_v9 = vmul.f32 %v438_v7, %v363_v3  ;;  %v574_v10 = vmul.f32 %v438_v7, %v364_v4  ;;  %v583_v11 = vmul.f32 %v463_v8, %v373_v5  ;;  %v493_v37 = vpop.permute.xlu0 %492 }
 0x139   :  { %632 = vst [vmem:[%s1359_s4 + $0x30] sm:$0xff] %v571_v0  ;;  %633 = vst.msk [vmem:[%s1359_s4 + $0x38] sm:$0xff] %vm626_vm1, %v572_v2  ;;  %v584_v12 = vmul.f32 %v463_v8, %v374_v6  ;;  %v453_v36 = vpop.permute.xlu1 %452 }
 0x13c   :  { %v503_v47 = vpop.permute.xlu0 %502 }
 0x13d   :  { %v458_v46 = vpop.permute.xlu1 %457 }
 0x140   :  { %v365_v13 = vld [vmem:[%s1358_s3 + $0x50] sm:$0xff]  ;;  %v366_v14 = vld [vmem:[%s1358_s3 + $0x58] sm:$0xff]  ;;  %v513_v57 = vpop.permute.xlu0 %512 }
 0x141   :  { %v377_v15 = vld [vmem:[%s1358_s3 + $0xb0] sm:$0xff]  ;;  %v378_v16 = vld [vmem:[%s1358_s3 + $0xb8] sm:$0xff]  ;;  %v575_v19 = vmul.f32 %v443_v17, %v365_v13  ;;  %v576_v20 = vmul.f32 %v443_v17, %v366_v14  ;;  %v468_v56 = vpop.permute.xlu1 %467 }
 0x142   :  { %634 = vst [vmem:[%s1359_s4 + $0x40] sm:$0xff] %v573_v9  ;;  %635 = vst.msk [vmem:[%s1359_s4 + $0x48] sm:$0xff] %vm626_vm1, %v574_v10  ;;  %v587_v21 = vmul.f32 %v473_v18, %v377_v15  ;;  %v588_v22 = vmul.f32 %v473_v18, %v378_v16 }
 0x143   :  { %644 = vst [vmem:[%s1359_s4 + $0x90] sm:$0xff] %v583_v11  ;;  %645 = vst.msk [vmem:[%s1359_s4 + $0x98] sm:$0xff] %vm626_vm1, %v584_v12 }
 0x144   :  { %v523_v4 = vpop.permute.xlu0 %522 }
 0x145   :  { %v478_v3 = vpop.permute.xlu1 %477 }
 0x148   :  { %v533_v14 = vpop.permute.xlu0 %532 }
 0x149   :  { %v488_v13 = vpop.permute.xlu1 %487 }
 0x14a   :  { %v367_v23 = vld [vmem:[%s1358_s3 + $0x60] sm:$0xff]  ;;  %v368_v24 = vld [vmem:[%s1358_s3 + $0x68] sm:$0xff]  ;;  %v381_v25 = vld [vmem:[%s1358_s3 + $0xd0] sm:$0xff] }
 0x14b   :  { %v382_v26 = vld [vmem:[%s1358_s3 + $0xd8] sm:$0xff]  ;;  %v577_v29 = vmul.f32 %v448_v27, %v367_v23  ;;  %v578_v30 = vmul.f32 %v448_v27, %v368_v24  ;;  %v591_v31 = vmul.f32 %v483_v28, %v381_v25 }
 0x14c   :  { %636 = vst [vmem:[%s1359_s4 + $0x50] sm:$0xff] %v575_v19  ;;  %637 = vst.msk [vmem:[%s1359_s4 + $0x58] sm:$0xff] %vm626_vm1, %v576_v20  ;;  %v592_v32 = vmul.f32 %v483_v28, %v382_v26  ;;  %v543_v24 = vpop.permute.xlu0 %542 }
 0x14d   :  { %648 = vst [vmem:[%s1359_s4 + $0xb0] sm:$0xff] %v587_v21  ;;  %649 = vst.msk [vmem:[%s1359_s4 + $0xb8] sm:$0xff] %vm626_vm1, %v588_v22  ;;  %v498_v23 = vpop.permute.xlu1 %497 }
 0x154   :  { %v369_v33 = vld [vmem:[%s1358_s3 + $0x70] sm:$0xff]  ;;  %v370_v1 = vld [vmem:[%s1358_s3 + $0x78] sm:$0xff] }
 0x155   :  { %v385_v34 = vld [vmem:[%s1358_s3 + $0xf0] sm:$0xff]  ;;  %v386_v35 = vld [vmem:[%s1358_s3 + $0xf8] sm:$0xff]  ;;  %v579_v38 = vmul.f32 %v453_v36, %v369_v33  ;;  %v580_v39 = vmul.f32 %v453_v36, %v370_v1  ;;  %v508_v33 = vpop.permute.xlu1 %507  ;;  %v553_v1 = vpop.permute.xlu0 %552 }
 0x156   :  { %638 = vst [vmem:[%s1359_s4 + $0x60] sm:$0xff] %v577_v29  ;;  %639 = vst.msk [vmem:[%s1359_s4 + $0x68] sm:$0xff] %vm626_vm1, %v578_v30  ;;  %v595_v40 = vmul.f32 %v493_v37, %v385_v34  ;;  %v596_v41 = vmul.f32 %v493_v37, %v386_v35 }
 0x157   :  { %652 = vst [vmem:[%s1359_s4 + $0xd0] sm:$0xff] %v591_v31  ;;  %653 = vst.msk [vmem:[%s1359_s4 + $0xd8] sm:$0xff] %vm626_vm1, %v592_v32 }
 0x15e   :  { %v371_v42 = vld [vmem:[%s1358_s3 + $0x80] sm:$0xff]  ;;  %v372_v43 = vld [vmem:[%s1358_s3 + $0x88] sm:$0xff]  ;;  %v389_v44 = vld [vmem:[%s1358_s3 + $0x110] sm:$0xff] }
 0x15f   :  { %v390_v45 = vld [vmem:[%s1358_s3 + $0x118] sm:$0xff]  ;;  %v581_v48 = vmul.f32 %v458_v46, %v371_v42  ;;  %v582_v49 = vmul.f32 %v458_v46, %v372_v43  ;;  %v599_v50 = vmul.f32 %v503_v47, %v389_v44  ;;  %v518_v42 = vpop.permute.xlu1 %517  ;;  %v563_v43 = vpop.permute.xlu0 %562 }
 0x160   :  { %640 = vst [vmem:[%s1359_s4 + $0x70] sm:$0xff] %v579_v38  ;;  %641 = vst.msk [vmem:[%s1359_s4 + $0x78] sm:$0xff] %vm626_vm1, %v580_v39  ;;  %v600_v51 = vmul.f32 %v503_v47, %v390_v45 }
 0x161   :  { %656 = vst [vmem:[%s1359_s4 + $0xf0] sm:$0xff] %v595_v40  ;;  %657 = vst.msk [vmem:[%s1359_s4 + $0xf8] sm:$0xff] %vm626_vm1, %v596_v41 }
 0x168   :  { %v375_v52 = vld [vmem:[%s1358_s3 + $0xa0] sm:$0xff]  ;;  %v376_v53 = vld [vmem:[%s1358_s3 + $0xa8] sm:$0xff]  ;;  %v393_v54 = vld [vmem:[%s1358_s3 + $0x130] sm:$0xff] }
 0x169   :  { %v394_v55 = vld [vmem:[%s1358_s3 + $0x138] sm:$0xff]  ;;  %v585_v58 = vmul.f32 %v468_v56, %v375_v52  ;;  %v586_v59 = vmul.f32 %v468_v56, %v376_v53  ;;  %v603_v60 = vmul.f32 %v513_v57, %v393_v54 }
 0x16a   :  { %642 = vst [vmem:[%s1359_s4 + $0x80] sm:$0xff] %v581_v48  ;;  %643 = vst.msk [vmem:[%s1359_s4 + $0x88] sm:$0xff] %vm626_vm1, %v582_v49  ;;  %v604_v61 = vmul.f32 %v513_v57, %v394_v55 }
 0x16b   :  { %660 = vst [vmem:[%s1359_s4 + $0x110] sm:$0xff] %v599_v50  ;;  %661 = vst.msk [vmem:[%s1359_s4 + $0x118] sm:$0xff] %vm626_vm1, %v600_v51  ;;  %v528_v50 = vpop.permute.xlu1 %527 }
 0x16f   :  { %v538_v55 = vpop.permute.xlu1 %537 }
 0x172   :  { %v379_v62 = vld [vmem:[%s1358_s3 + $0xc0] sm:$0xff]  ;;  %v380_v63 = vld [vmem:[%s1358_s3 + $0xc8] sm:$0xff]  ;;  %v397_v0 = vld [vmem:[%s1358_s3 + $0x150] sm:$0xff] }
 0x173   :  { %v398_v2 = vld [vmem:[%s1358_s3 + $0x158] sm:$0xff]  ;;  %v589_v5 = vmul.f32 %v478_v3, %v379_v62  ;;  %v590_v6 = vmul.f32 %v478_v3, %v380_v63  ;;  %v607_v7 = vmul.f32 %v523_v4, %v397_v0 }
 0x174   :  { %646 = vst [vmem:[%s1359_s4 + $0xa0] sm:$0xff] %v585_v58  ;;  %647 = vst.msk [vmem:[%s1359_s4 + $0xa8] sm:$0xff] %vm626_vm1, %v586_v59  ;;  %v608_v8 = vmul.f32 %v523_v4, %v398_v2 }
 0x175   :  { %664 = vst [vmem:[%s1359_s4 + $0x130] sm:$0xff] %v603_v60  ;;  %665 = vst.msk [vmem:[%s1359_s4 + $0x138] sm:$0xff] %vm626_vm1, %v604_v61  ;;  %v548_v60 = vpop.permute.xlu1 %547 }
 0x179   :  { %v558_v2 = vpop.permute.xlu1 %557 }
 0x17c   :  { %v383_v9 = vld [vmem:[%s1358_s3 + $0xe0] sm:$0xff]  ;;  %v384_v10 = vld [vmem:[%s1358_s3 + $0xe8] sm:$0xff]  ;;  %v401_v11 = vld [vmem:[%s1358_s3 + $0x170] sm:$0xff] }
 0x17d   :  { %v402_v12 = vld [vmem:[%s1358_s3 + $0x178] sm:$0xff]  ;;  %v593_v15 = vmul.f32 %v488_v13, %v383_v9  ;;  %v594_v16 = vmul.f32 %v488_v13, %v384_v10  ;;  %v611_v17 = vmul.f32 %v533_v14, %v401_v11 }
 0x17e   :  { %650 = vst [vmem:[%s1359_s4 + $0xc0] sm:$0xff] %v589_v5  ;;  %651 = vst.msk [vmem:[%s1359_s4 + $0xc8] sm:$0xff] %vm626_vm1, %v590_v6  ;;  %v612_v18 = vmul.f32 %v533_v14, %v402_v12 }
 0x17f   :  { %668 = vst [vmem:[%s1359_s4 + $0x150] sm:$0xff] %v607_v7  ;;  %669 = vst.msk [vmem:[%s1359_s4 + $0x158] sm:$0xff] %vm626_vm1, %v608_v8 }
 0x186   :  { %v387_v19 = vld [vmem:[%s1358_s3 + $0x100] sm:$0xff]  ;;  %v388_v20 = vld [vmem:[%s1358_s3 + $0x108] sm:$0xff]  ;;  %v405_v21 = vld [vmem:[%s1358_s3 + $0x190] sm:$0xff] }
 0x187   :  { %v406_v22 = vld [vmem:[%s1358_s3 + $0x198] sm:$0xff]  ;;  %v597_v25 = vmul.f32 %v498_v23, %v387_v19  ;;  %v598_v26 = vmul.f32 %v498_v23, %v388_v20  ;;  %v615_v27 = vmul.f32 %v543_v24, %v405_v21 }
 0x188   :  { %654 = vst [vmem:[%s1359_s4 + $0xe0] sm:$0xff] %v593_v15  ;;  %655 = vst.msk [vmem:[%s1359_s4 + $0xe8] sm:$0xff] %vm626_vm1, %v594_v16  ;;  %v616_v28 = vmul.f32 %v543_v24, %v406_v22 }
 0x189   :  { %672 = vst [vmem:[%s1359_s4 + $0x170] sm:$0xff] %v611_v17  ;;  %673 = vst.msk [vmem:[%s1359_s4 + $0x178] sm:$0xff] %vm626_vm1, %v612_v18 }
 0x190   :  { %v391_v29 = vld [vmem:[%s1358_s3 + $0x120] sm:$0xff]  ;;  %v392_v30 = vld [vmem:[%s1358_s3 + $0x128] sm:$0xff]  ;;  %v409_v31 = vld [vmem:[%s1358_s3 + $0x1b0] sm:$0xff] }
 0x191   :  { %v410_v32 = vld [vmem:[%s1358_s3 + $0x1b8] sm:$0xff]  ;;  %v601_v34 = vmul.f32 %v508_v33, %v391_v29  ;;  %v602_v35 = vmul.f32 %v508_v33, %v392_v30  ;;  %v619_v36 = vmul.f32 %v553_v1, %v409_v31 }
 0x192   :  { %658 = vst [vmem:[%s1359_s4 + $0x100] sm:$0xff] %v597_v25  ;;  %659 = vst.msk [vmem:[%s1359_s4 + $0x108] sm:$0xff] %vm626_vm1, %v598_v26  ;;  %v620_v37 = vmul.f32 %v553_v1, %v410_v32 }
 0x193   :  { %676 = vst [vmem:[%s1359_s4 + $0x190] sm:$0xff] %v615_v27  ;;  %677 = vst.msk [vmem:[%s1359_s4 + $0x198] sm:$0xff] %vm626_vm1, %v616_v28 }
 0x19a   :  { %v395_v38 = vld [vmem:[%s1358_s3 + $0x140] sm:$0xff]  ;;  %v396_v39 = vld [vmem:[%s1358_s3 + $0x148] sm:$0xff]  ;;  %v413_v40 = vld [vmem:[%s1358_s3 + $0x1d0] sm:$0xff] }
 0x19b   :  { %v414_v41 = vld [vmem:[%s1358_s3 + $0x1d8] sm:$0xff]  ;;  %v605_v44 = vmul.f32 %v518_v42, %v395_v38  ;;  %v606_v45 = vmul.f32 %v518_v42, %v396_v39  ;;  %v623_v46 = vmul.f32 %v563_v43, %v413_v40 }
 0x19c   :  { %662 = vst [vmem:[%s1359_s4 + $0x120] sm:$0xff] %v601_v34  ;;  %663 = vst.msk [vmem:[%s1359_s4 + $0x128] sm:$0xff] %vm626_vm1, %v602_v35  ;;  %v624_v47 = vmul.f32 %v563_v43, %v414_v41 }
 0x19d   :  { %680 = vst [vmem:[%s1359_s4 + $0x1b0] sm:$0xff] %v619_v36  ;;  %681 = vst.msk [vmem:[%s1359_s4 + $0x1b8] sm:$0xff] %vm626_vm1, %v620_v37 }
 0x1a4   :  { %v399_v48 = vld [vmem:[%s1358_s3 + $0x160] sm:$0xff]  ;;  %v400_v49 = vld [vmem:[%s1358_s3 + $0x168] sm:$0xff] }
 0x1a5   :  { %666 = vst [vmem:[%s1359_s4 + $0x140] sm:$0xff] %v605_v44  ;;  %667 = vst.msk [vmem:[%s1359_s4 + $0x148] sm:$0xff] %vm626_vm1, %v606_v45  ;;  %v609_v51 = vmul.f32 %v528_v50, %v399_v48  ;;  %v610_v52 = vmul.f32 %v528_v50, %v400_v49 }
 0x1a6   :  { %684 = vst [vmem:[%s1359_s4 + $0x1d0] sm:$0xff] %v623_v46  ;;  %685 = vst.msk [vmem:[%s1359_s4 + $0x1d8] sm:$0xff] %vm626_vm1, %v624_v47 }
 0x1ad   :  { %v403_v53 = vld [vmem:[%s1358_s3 + $0x180] sm:$0xff]  ;;  %v404_v54 = vld [vmem:[%s1358_s3 + $0x188] sm:$0xff] }
 0x1ae   :  { %670 = vst [vmem:[%s1359_s4 + $0x160] sm:$0xff] %v609_v51  ;;  %671 = vst.msk [vmem:[%s1359_s4 + $0x168] sm:$0xff] %vm626_vm1, %v610_v52  ;;  %v613_v56 = vmul.f32 %v538_v55, %v403_v53  ;;  %v614_v57 = vmul.f32 %v538_v55, %v404_v54 }
 0x1b5   :  { %v407_v58 = vld [vmem:[%s1358_s3 + $0x1a0] sm:$0xff]  ;;  %v408_v59 = vld [vmem:[%s1358_s3 + $0x1a8] sm:$0xff] }
 0x1b6   :  { %674 = vst [vmem:[%s1359_s4 + $0x180] sm:$0xff] %v613_v56  ;;  %675 = vst.msk [vmem:[%s1359_s4 + $0x188] sm:$0xff] %vm626_vm1, %v614_v57  ;;  %v617_v61 = vmul.f32 %v548_v60, %v407_v58  ;;  %v618_v62 = vmul.f32 %v548_v60, %v408_v59 }
 0x1bd   :  { %v411_v63 = vld [vmem:[%s1358_s3 + $0x1c0] sm:$0xff]  ;;  %v412_v0 = vld [vmem:[%s1358_s3 + $0x1c8] sm:$0xff] }
 0x1be   :  { %678 = vst [vmem:[%s1359_s4 + $0x1a0] sm:$0xff] %v617_v61  ;;  %679 = vst.msk [vmem:[%s1359_s4 + $0x1a8] sm:$0xff] %vm626_vm1, %v618_v62  ;;  %v621_v3 = vmul.f32 %v558_v2, %v411_v63  ;;  %v622_v4 = vmul.f32 %v558_v2, %v412_v0 }
 0x1c0   :  { %682 = vst [vmem:[%s1359_s4 + $0x1c0] sm:$0xff] %v621_v3  ;;  %683 = vst.msk [vmem:[%s1359_s4 + $0x1c8] sm:$0xff] %vm626_vm1, %v622_v4 }

</bundles_post_ra>
